<compile_context>
chip_gen: v7x
topology: tpu7x:2x2x1
jax: 0.10.0
libtpu: 0.0.40
codegen_flags: <defaults>
</compile_context>

<pallas_src>
import jax
import jax.numpy as jnp
from jax.experimental import pallas as pl
from jax.experimental.pallas import tpu as pltpu


def dnnet_kernel(x_ref, g_ref, w1x_ref, w1g_ref, b1_ref,
                 w2_ref, b2_ref, w3_ref, b3_ref, o_ref):
    # fc1: split matmul over the packed x (K=128) and g (K=32) parts + relu.
    h = jnp.dot(x_ref[...], w1x_ref[...], preferred_element_type=jnp.float32)
    h = h + jnp.dot(g_ref[...].astype(jnp.float32), w1g_ref[...],
                    preferred_element_type=jnp.float32)
    h = jnp.maximum(h + b1_ref[...], 0.0)
    # fc2 + relu (block-diagonal 128x128 weight keeps packed rows separate).
    h = jnp.dot(h, w2_ref[...], preferred_element_type=jnp.float32)
    h = jnp.maximum(h + b2_ref[...], 0.0)
    # fc3 + tanh; fully lane-dense (128-wide) output store.
    h = jnp.dot(h, w3_ref[...], preferred_element_type=jnp.float32)
    o_ref[...] = jnp.tanh(h + b3_ref[...])


def _block_diag2(w):
    """(in, out) -> (2*in, 2*out) block-diagonal [[w, 0], [0, w]]."""
    z = jnp.zeros_like(w)
    top = jnp.concatenate([w, z], axis=1)
    bot = jnp.concatenate([z, w], axis=1)
    return jnp.concatenate([top, bot], axis=0)


def dnnet_forward(x, g, params, *, block_b=2048):
    """DNnet forward.

    x: (B, 64) float; g: (B, 16) any numeric dtype (cast to float in-kernel,
    mirroring torch's g.float()).  block_b is in packed rows (2 batch rows per
    packed row), i.e. the default 2048 processes 4096 batch rows per step.
    """
    w1, b1, w2, b2, w3, b3 = params
    B = x.shape[0]

    x = x.astype(jnp.float32)
    # Pack two batch rows per lane-row.  Pad at most one row (odd B); never
    # pad up to the block size (the trailing grid block may be partial).
    B_even = B + (B % 2)
    if B_even != B:
        x = jnp.pad(x, ((0, 1), (0, 0)))
        g = jnp.pad(g, ((0, 1), (0, 0)))
    B2 = B_even // 2
    xp = x.reshape(B2, 128)            # free row-major view
    gp = g.reshape(B2, 32)             # keeps g's dtype; cast to f32 in-kernel

    # Block-diagonal weights so packed rows never mix.  Layout (in, out).
    w1x = _block_diag2(w1[:, :64].T.astype(jnp.float32))     # (128, 128)
    w1g = _block_diag2(w1[:, 64:].T.astype(jnp.float32))     # (32, 128)
    w2d = _block_diag2(w2.T.astype(jnp.float32))              # (128, 128)
    w3d = _block_diag2(w3.T.astype(jnp.float32))              # (128, 128)
    b1r = jnp.tile(b1.astype(jnp.float32), 2)[None, :]        # (1, 128)
    b2r = jnp.tile(b2.astype(jnp.float32), 2)[None, :]        # (1, 128)
    b3r = jnp.tile(b3.astype(jnp.float32), 2)[None, :]        # (1, 128)

    # Batch block: the whole batch if it fits in one block (block == full dim
    # is always legal), otherwise block_b packed rows (multiple of 8 sublanes)
    # with a possibly-partial trailing block.
    if B2 <= block_b:
        blk, nb = B2, 1
    else:
        blk = max(8, (block_b // 8) * 8)
        nb = pl.cdiv(B2, blk)

    def resident(a):
        # Constant index map -> DMA'd once, stays VMEM-resident for all steps.
        return pl.BlockSpec(a.shape, lambda i: (0, 0))

    out = pl.pallas_call(
        dnnet_kernel,
        out_shape=jax.ShapeDtypeStruct((B2, 128), jnp.float32),
        grid=(nb,),
        in_specs=[
            pl.BlockSpec((blk, 128), lambda i: (i, 0)),   # packed x block
            pl.BlockSpec((blk, 32), lambda i: (i, 0)),    # packed g block
            resident(w1x), resident(w1g), resident(b1r),
            resident(w2d), resident(b2r),
            resident(w3d), resident(b3r),
        ],
        out_specs=pl.BlockSpec((blk, 128), lambda i: (i, 0)),
        compiler_params=pltpu.CompilerParams(
            dimension_semantics=("parallel",),   # megacore-shard the batch
            vmem_limit_bytes=32 << 20,           # safe on v5e/v6e/v7x
        ),
    )(xp, gp, w1x, w1g, b1r, w2d, b2r, w3d, b3r)

    y = out.reshape(B_even, 64)        # free row-major view back to (B, 64)
    return y if B_even == B else y[:B]


def init_params(key):
    """Deterministic synthetic parameters matching nn.Linear shapes."""
    ks = jax.random.split(key, 6)
    # PyTorch Linear weight shape is (out_features, in_features).
    w1 = jax.random.normal(ks[0], (64, 80), jnp.float32) * 0.05
    b1 = jax.random.normal(ks[1], (64,), jnp.float32) * 0.05
    w2 = jax.random.normal(ks[2], (64, 64), jnp.float32) * 0.05
    b2 = jax.random.normal(ks[3], (64,), jnp.float32) * 0.05
    w3 = jax.random.normal(ks[4], (64, 64), jnp.float32) * 0.05
    b3 = jax.random.normal(ks[5], (64,), jnp.float32) * 0.05
    return (w1, b1, w2, b2, w3, b3)


def reference_forward(x, g, params):
    """Pure-JAX reference mirroring the PyTorch module."""
    w1, b1, w2, b2, w3, b3 = params
    xg = jnp.concatenate([x.astype(jnp.float32), g.astype(jnp.float32)], axis=1)
    h = jax.nn.relu(xg @ w1.T + b1)
    h = jax.nn.relu(h @ w2.T + b2)
    return jnp.tanh(h @ w3.T + b3)


if __name__ == "__main__":
    key = jax.random.PRNGKey(0)
    kx, kg, kp = jax.random.split(key, 3)
    params = init_params(kp)

    # Small demo batch (single block).
    B = 8
    x = jax.random.normal(kx, (B, 64), jnp.float32)
    g = jax.random.randint(kg, (B, 16), 0, 2, dtype=jnp.int32)  # torch g.float()
    y = jax.block_until_ready(dnnet_forward(x, g, params))
    y_ref = reference_forward(x, g, params)
    assert y.shape == (B, 64)
    assert jnp.allclose(y, y_ref, atol=1e-5, rtol=1e-5), "mismatch vs reference (B=8)"

    # Odd batch -> exercises the single-row pad-to-even path.
    Bo = 13
    xo = jax.random.normal(jax.random.fold_in(kx, 1), (Bo, 64), jnp.float32)
    go = jax.random.randint(jax.random.fold_in(kg, 1), (Bo, 16), 0, 2, dtype=jnp.int32)
    yo = jax.block_until_ready(dnnet_forward(xo, go, params))
    yo_ref = reference_forward(xo, go, params)
    assert yo.shape == (Bo, 64)
    assert jnp.allclose(yo, yo_ref, atol=1e-5, rtol=1e-5), "mismatch vs reference (B=13)"

    # Multi-block grid with a partial trailing block (no pad-to-block-size).
    Bm = 50
    xm = jax.random.normal(jax.random.fold_in(kx, 2), (Bm, 64), jnp.float32)
    gm = jax.random.randint(jax.random.fold_in(kg, 2), (Bm, 16), 0, 2, dtype=jnp.int32)
    ym = jax.block_until_ready(dnnet_forward(xm, gm, params, block_b=8))
    ym_ref = reference_forward(xm, gm, params)
    assert ym.shape == (Bm, 64)
    assert jnp.allclose(ym, ym_ref, atol=1e-5, rtol=1e-5), "mismatch vs reference (B=50)"

    print("KERNEL_OK")
</pallas_src>

<mosaic_0001>
module attributes {stable_mosaic.version = 11 : i64} {
  func.func @dnnet_kernel(%arg0: i32, %arg1: memref<4x128xf32, #tpu.memory_space<vmem>>, %arg2: memref<4x32xi32, #tpu.memory_space<vmem>>, %arg3: memref<128x128xf32, #tpu.memory_space<vmem>>, %arg4: memref<32x128xf32, #tpu.memory_space<vmem>>, %arg5: memref<1x128xf32, #tpu.memory_space<vmem>>, %arg6: memref<128x128xf32, #tpu.memory_space<vmem>>, %arg7: memref<1x128xf32, #tpu.memory_space<vmem>>, %arg8: memref<128x128xf32, #tpu.memory_space<vmem>>, %arg9: memref<1x128xf32, #tpu.memory_space<vmem>>, %arg10: memref<4x128xf32, #tpu.memory_space<vmem>>) attributes {dimension_semantics = [#tpu.dimension_semantics<parallel>], iteration_bounds = array<i64: 1>, scalar_prefetch = 0 : i64, scratch_operands = 0 : i64, tpu.core_type = #tpu.core_type<tc>, window_params = [{transform_indices = @transform_0, window_bounds = array<i64: 4, 128>}, {transform_indices = @transform_1, window_bounds = array<i64: 4, 32>}, {pipeline_mode = #tpu.pipeline_mode<synchronous>, transform_indices = @transform_2, window_bounds = array<i64: 128, 128>}, {pipeline_mode = #tpu.pipeline_mode<synchronous>, transform_indices = @transform_3, window_bounds = array<i64: 32, 128>}, {pipeline_mode = #tpu.pipeline_mode<synchronous>, transform_indices = @transform_4, window_bounds = array<i64: 1, 128>}, {pipeline_mode = #tpu.pipeline_mode<synchronous>, transform_indices = @transform_5, window_bounds = array<i64: 128, 128>}, {pipeline_mode = #tpu.pipeline_mode<synchronous>, transform_indices = @transform_6, window_bounds = array<i64: 1, 128>}, {pipeline_mode = #tpu.pipeline_mode<synchronous>, transform_indices = @transform_7, window_bounds = array<i64: 128, 128>}, {pipeline_mode = #tpu.pipeline_mode<synchronous>, transform_indices = @transform_8, window_bounds = array<i64: 1, 128>}, {transform_indices = @transform_9, window_bounds = array<i64: 4, 128>}]} {
    %c0 = arith.constant 0 : index
    %c0_0 = arith.constant 0 : index
    %0 = vector.load %arg1[%c0, %c0_0] : memref<4x128xf32, #tpu.memory_space<vmem>>, vector<4x128xf32>
    %c0_1 = arith.constant 0 : index
    %c0_2 = arith.constant 0 : index
    %1 = vector.load %arg3[%c0_1, %c0_2] : memref<128x128xf32, #tpu.memory_space<vmem>>, vector<128x128xf32>
    %cst = arith.constant dense<0.000000e+00> : vector<4x128xf32>
    %2 = tpu.matmul %0, %1, %cst {dimension_numbers = #tpu.dot_dimension_numbers<[1], [0], [0], [1], [0, 0, 1, 1], [], []>} : vector<4x128xf32>, vector<128x128xf32>, vector<4x128xf32> -> vector<4x128xf32>
    %c0_3 = arith.constant 0 : index
    %c0_4 = arith.constant 0 : index
    %3 = vector.load %arg2[%c0_3, %c0_4] : memref<4x32xi32, #tpu.memory_space<vmem>>, vector<4x32xi32>
    %4 = arith.sitofp %3 : vector<4x32xi32> to vector<4x32xf32>
    %c0_5 = arith.constant 0 : index
    %c0_6 = arith.constant 0 : index
    %5 = vector.load %arg4[%c0_5, %c0_6] : memref<32x128xf32, #tpu.memory_space<vmem>>, vector<32x128xf32>
    %cst_7 = arith.constant dense<0.000000e+00> : vector<4x128xf32>
    %6 = tpu.matmul %4, %5, %cst_7 {dimension_numbers = #tpu.dot_dimension_numbers<[1], [0], [0], [1], [0, 0, 1, 1], [], []>} : vector<4x32xf32>, vector<32x128xf32>, vector<4x128xf32> -> vector<4x128xf32>
    %7 = arith.addf %2, %6 : vector<4x128xf32>
    %c0_8 = arith.constant 0 : index
    %c0_9 = arith.constant 0 : index
    %8 = vector.load %arg5[%c0_8, %c0_9] : memref<1x128xf32, #tpu.memory_space<vmem>>, vector<1x128xf32>
    %9 = vector.broadcast %8 : vector<1x128xf32> to vector<4x128xf32>
    %10 = arith.addf %7, %9 : vector<4x128xf32>
    %cst_10 = arith.constant 0.000000e+00 : f32
    %11 = vector.broadcast %cst_10 : f32 to vector<4x128xf32>
    %12 = arith.maximumf %10, %11 : vector<4x128xf32>
    %c0_11 = arith.constant 0 : index
    %c0_12 = arith.constant 0 : index
    %13 = vector.load %arg6[%c0_11, %c0_12] : memref<128x128xf32, #tpu.memory_space<vmem>>, vector<128x128xf32>
    %cst_13 = arith.constant dense<0.000000e+00> : vector<4x128xf32>
    %14 = tpu.matmul %12, %13, %cst_13 {dimension_numbers = #tpu.dot_dimension_numbers<[1], [0], [0], [1], [0, 0, 1, 1], [], []>} : vector<4x128xf32>, vector<128x128xf32>, vector<4x128xf32> -> vector<4x128xf32>
    %c0_14 = arith.constant 0 : index
    %c0_15 = arith.constant 0 : index
    %15 = vector.load %arg7[%c0_14, %c0_15] : memref<1x128xf32, #tpu.memory_space<vmem>>, vector<1x128xf32>
    %16 = vector.broadcast %15 : vector<1x128xf32> to vector<4x128xf32>
    %17 = arith.addf %14, %16 : vector<4x128xf32>
    %cst_16 = arith.constant 0.000000e+00 : f32
    %18 = vector.broadcast %cst_16 : f32 to vector<4x128xf32>
    %19 = arith.maximumf %17, %18 : vector<4x128xf32>
    %c0_17 = arith.constant 0 : index
    %c0_18 = arith.constant 0 : index
    %20 = vector.load %arg8[%c0_17, %c0_18] : memref<128x128xf32, #tpu.memory_space<vmem>>, vector<128x128xf32>
    %cst_19 = arith.constant dense<0.000000e+00> : vector<4x128xf32>
    %21 = tpu.matmul %19, %20, %cst_19 {dimension_numbers = #tpu.dot_dimension_numbers<[1], [0], [0], [1], [0, 0, 1, 1], [], []>} : vector<4x128xf32>, vector<128x128xf32>, vector<4x128xf32> -> vector<4x128xf32>
    %c0_20 = arith.constant 0 : index
    %c0_21 = arith.constant 0 : index
    %22 = vector.load %arg9[%c0_20, %c0_21] : memref<1x128xf32, #tpu.memory_space<vmem>>, vector<1x128xf32>
    %23 = vector.broadcast %22 : vector<1x128xf32> to vector<4x128xf32>
    %24 = arith.addf %21, %23 : vector<4x128xf32>
    %25 = math.tanh %24 : vector<4x128xf32>
    %c0_22 = arith.constant 0 : index
    %c0_23 = arith.constant 0 : index
    %26 = vector.load %arg10[%c0_22, %c0_23] : memref<4x128xf32, #tpu.memory_space<vmem>>, vector<4x128xf32>
    tpu.vector_store %arg10[%c0_22, %c0_23], %25 {strides = array<i32>} : memref<4x128xf32, #tpu.memory_space<vmem>>, vector<4x128xf32>,
    return
  }
  func.func @transform_0(%arg0: i32) -> (i32, i32) {
    %c0_i32 = arith.constant 0 : i32
    %c0_i32_0 = arith.constant 0 : i32
    return %arg0, %c0_i32 : i32, i32
  }
  func.func @transform_1(%arg0: i32) -> (i32, i32) {
    %c0_i32 = arith.constant 0 : i32
    %c0_i32_0 = arith.constant 0 : i32
    return %arg0, %c0_i32 : i32, i32
  }
  func.func @transform_2(%arg0: i32) -> (i32, i32) {
    %c0_i32 = arith.constant 0 : i32
    %c0_i32_0 = arith.constant 0 : i32
    %c0_i32_1 = arith.constant 0 : i32
    return %c0_i32, %c0_i32_0 : i32, i32
  }
  func.func @transform_3(%arg0: i32) -> (i32, i32) {
    %c0_i32 = arith.constant 0 : i32
    %c0_i32_0 = arith.constant 0 : i32
    %c0_i32_1 = arith.constant 0 : i32
    return %c0_i32, %c0_i32_0 : i32, i32
  }
  func.func @transform_4(%arg0: i32) -> (i32, i32) {
    %c0_i32 = arith.constant 0 : i32
    %c0_i32_0 = arith.constant 0 : i32
    %c0_i32_1 = arith.constant 0 : i32
    return %c0_i32, %c0_i32_0 : i32, i32
  }
  func.func @transform_5(%arg0: i32) -> (i32, i32) {
    %c0_i32 = arith.constant 0 : i32
    %c0_i32_0 = arith.constant 0 : i32
    %c0_i32_1 = arith.constant 0 : i32
    return %c0_i32, %c0_i32_0 : i32, i32
  }
  func.func @transform_6(%arg0: i32) -> (i32, i32) {
    %c0_i32 = arith.constant 0 : i32
    %c0_i32_0 = arith.constant 0 : i32
    %c0_i32_1 = arith.constant 0 : i32
    return %c0_i32, %c0_i32_0 : i32, i32
  }
  func.func @transform_7(%arg0: i32) -> (i32, i32) {
    %c0_i32 = arith.constant 0 : i32
    %c0_i32_0 = arith.constant 0 : i32
    %c0_i32_1 = arith.constant 0 : i32
    return %c0_i32, %c0_i32_0 : i32, i32
  }
  func.func @transform_8(%arg0: i32) -> (i32, i32) {
    %c0_i32 = arith.constant 0 : i32
    %c0_i32_0 = arith.constant 0 : i32
    %c0_i32_1 = arith.constant 0 : i32
    return %c0_i32, %c0_i32_0 : i32, i32
  }
  func.func @transform_9(%arg0: i32) -> (i32, i32) {
    %c0_i32 = arith.constant 0 : i32
    %c0_i32_0 = arith.constant 0 : i32
    return %arg0, %c0_i32 : i32, i32
  }
}

</mosaic_0001>

<bundles_post_ra>
// kernel: tpu_custom_call.1
= control target key start
LH: loop header
LB: loop body
LE: loop exit
PB: predicated region body
PF: predicated region fallthrough
CT: control target
= control target key end

     0   :  { %14 = vsyncpa [#allocation3], 0  ;;  %s1127_s0 = inlined_call_operand.hbm [shape: f32[4,128], index: 0, kind: input, shape index: {}]   ;;  %s1128_s1 = inlined_call_operand.hbm [shape: s32[4,32], index: 1, kind: input, shape index: {}]   ;;  %s1129_s2 = inlined_call_operand.hbm [shape: f32[128,128], index: 2, kind: input, shape index: {}]   ;;  %s1130_s3 = inlined_call_operand.hbm [shape: f32[32,128], index: 3, kind: input, shape index: {}]   ;;  %s1131_s4 = inlined_call_operand.vmem [shape: f32[1,128], index: 4, kind: input, shape index: {}]   ;;  %s1132_s5 = inlined_call_operand.hbm [shape: f32[128,128], index: 5, kind: input, shape index: {}]   ;;  %s1133_s6 = inlined_call_operand.vmem [shape: f32[1,128], index: 6, kind: input, shape index: {}]   ;;  %s1134_s7 = inlined_call_operand.hbm [shape: f32[128,128], index: 7, kind: input, shape index: {}]   ;;  %s1135_s8 = inlined_call_operand.vmem [shape: f32[1,128], index: 8, kind: input, shape index: {}]   ;;  %s1136_s9 = inlined_call_operand.hbm [shape: f32[4,128], index: 9, kind: output, shape index: {}]  }
   0x1   :  { %15 = vsyncpa [#allocation6], 0 }
   0x2   :  { %16 = vsyncpa [#allocation9], 0 }
   0x3   :  { %17 = vsyncpa [#allocation12], 0 }
   0x4   :  { %18 = vsyncpa [#allocation4], 0  ;;  %s926_s30 = smov [#allocation5]   ;;  %s762_s13 = scalar_lea.hbm %s1128_s1, 64 }
   0x5   :  { %s35_s10 = sshll.u32 %s926_s30, 4  ;;  %p763_p0 = scmp.ne.s32.totalorder %s1128_s1, %s762_s13  ;;  %s36_s10 = int_to_ptr.vmem [resolvable:$true] %s35_s10 }
   0x6   :  { %p766_p1 = scmp.lt.u32.totalorder %s762_s13, %s1128_s1 }
   0x8   :  { %p768_p2 = pnand %p766_p1, %p763_p0 }
   0xa   :  { %771 = shalt.err (!%p768_p2)
}
   0xb   :  { %s772_s18 = scalar_lea.vmem %s36_s10, 64  ;;  %p777_p4 = scmp.lt.s32.totalorder %s36_s10, %s36_s10 }
   0xc   :  { %p773_p3 = scmp.ne.s32.totalorder %s36_s10, %s772_s18  ;;  %p778_p5 = scmp.lt.s32.totalorder %s772_s18, %s772_s18 }
   0xe   :  { %p779_p6 = por %p778_p5, %p777_p4 }
  0x10   :  { %p780_p7 = pnand %p779_p6, %p773_p3 }
  0x12   :  { %783 = shalt.err (!%p780_p7)
}
  0x13   :  { %38 = dma.hbm_to_vmem [thread:$0]  %s1128_s1, 64, %s36_s10, [#allocation6]  }
  0x14   :  { %s927_s21 = smov [#allocation8]   ;;  %s928_s23 = smov [#allocation2]  }
  0x15   :  { %s56_s22 = sshll.u32 %s927_s21, 4  ;;  %s25_s24 = sshll.u32 %s928_s23, 4  ;;  %s57_s22 = int_to_ptr.vmem [resolvable:$true] %s56_s22  ;;  %s26_s24 = int_to_ptr.vmem [resolvable:$true] %s25_s24 }
  0x16   :  { %s784_s27 = scalar_lea.hbm %s1130_s3, 512 }
  0x17   :  { %p785_p8 = scmp.ne.s32.totalorder %s1130_s3, %s784_s27  ;;  %p788_p9 = scmp.lt.u32.totalorder %s784_s27, %s1130_s3 }
  0x19   :  { %p790_p10 = pnand %p788_p9, %p785_p8 }
  0x1b   :  { %793 = shalt.err (!%p790_p10)
}
  0x1c   :  { %s794_s1 = scalar_lea.vmem %s57_s22, 512  ;;  %p799_p12 = scmp.lt.s32.totalorder %s57_s22, %s57_s22 }
  0x1d   :  { %p795_p11 = scmp.ne.s32.totalorder %s57_s22, %s794_s1  ;;  %p800_p13 = scmp.lt.s32.totalorder %s794_s1, %s794_s1 }
  0x1f   :  { %p801_p0 = por %p800_p13, %p799_p12 }
  0x21   :  { %p802_p1 = pnand %p801_p0, %p795_p11 }
  0x23   :  { %805 = shalt.err (!%p802_p1)
}
  0x24   :  { %s929_s10 = smov 128   ;;  %s930_s12 = smov 8  }
  0x25   :  { %62 = dma.hbm_to_vmem [thread:$0]  %s1130_s3, 512, %s57_s22, [#allocation9], %s929_s10, %s929_s10, %s930_s12  }
  0x26   :  { %s806_s17 = scalar_lea.hbm %s1127_s0, 64 }
  0x27   :  { %p807_p2 = scmp.ne.s32.totalorder %s1127_s0, %s806_s17  ;;  %p810_p3 = scmp.lt.u32.totalorder %s806_s17, %s1127_s0 }
  0x29   :  { %p812_p4 = pnand %p810_p3, %p807_p2 }
  0x2b   :  { %815 = shalt.err (!%p812_p4)
}
  0x2c   :  { %s816_s23 = scalar_lea.vmem %s26_s24, 64  ;;  %p821_p6 = scmp.lt.s32.totalorder %s26_s24, %s26_s24 }
  0x2d   :  { %p817_p5 = scmp.ne.s32.totalorder %s26_s24, %s816_s23  ;;  %p822_p7 = scmp.lt.s32.totalorder %s816_s23, %s816_s23 }
  0x2f   :  { %p823_p8 = por %p822_p7, %p821_p6 }
  0x31   :  { %p824_p9 = pnand %p823_p8, %p817_p5 }
  0x33   :  { %827 = shalt.err (!%p824_p9)
}
  0x34   :  { %28 = dma.hbm_to_vmem [thread:$0]  %s1127_s0, 64, %s26_s24, [#allocation3]  }
  0x35   :  { %s931_s25 = smov [#allocation7]   ;;  %s932_s27 = smov [#allocation10]  }
  0x36   :  { %s44_s26 = sshll.u32 %s931_s25, 4  ;;  %s70_s28 = sshll.u32 %s932_s27, 4  ;;  %s45_s26 = int_to_ptr.vmem [resolvable:$true] %s44_s26  ;;  %s71_s28 = int_to_ptr.vmem [resolvable:$true] %s70_s28 }
  0x37   :  { %s828_s11 = scalar_lea.hbm %s1129_s2, 2048 }
  0x38   :  { %p829_p10 = scmp.ne.s32.totalorder %s1129_s2, %s828_s11  ;;  %p832_p11 = scmp.lt.u32.totalorder %s828_s11, %s1129_s2 }
  0x3a   :  { %p834_p12 = pnand %p832_p11, %p829_p10 }
  0x3c   :  { %837 = shalt.err (!%p834_p12)
}
  0x3d   :  { %s838_s0 = scalar_lea.vmem %s45_s26, 2048  ;;  %p843_p0 = scmp.lt.s32.totalorder %s45_s26, %s45_s26 }
  0x3e   :  { %p839_p13 = scmp.ne.s32.totalorder %s45_s26, %s838_s0  ;;  %p844_p1 = scmp.lt.s32.totalorder %s838_s0, %s838_s0 }
  0x40   :  { %p845_p2 = por %p844_p1, %p843_p0 }
  0x42   :  { %p846_p3 = pnand %p845_p2, %p839_p13 }
  0x44   :  { %849 = shalt.err (!%p846_p3)
}
  0x45   :  { %50 = dma.hbm_to_vmem [thread:$0]  %s1129_s2, 2048, %s45_s26, [#allocation6], %s929_s10, %s929_s10, %s930_s12  }
  0x46   :  { %s850_s19 = scalar_lea.hbm %s1132_s5, 2048 }
  0x47   :  { %p851_p4 = scmp.ne.s32.totalorder %s1132_s5, %s850_s19  ;;  %p854_p5 = scmp.lt.u32.totalorder %s850_s19, %s1132_s5 }
  0x49   :  { %p856_p6 = pnand %p854_p5, %p851_p4 }
  0x4b   :  { %859 = shalt.err (!%p856_p6)
}
  0x4c   :  { %s860_s22 = scalar_lea.vmem %s71_s28, 2048  ;;  %p865_p8 = scmp.lt.s32.totalorder %s71_s28, %s71_s28 }
  0x4d   :  { %p861_p7 = scmp.ne.s32.totalorder %s71_s28, %s860_s22  ;;  %p866_p9 = scmp.lt.s32.totalorder %s860_s22, %s860_s22 }
  0x4f   :  { %p867_p10 = por %p866_p9, %p865_p8 }
  0x51   :  { %p868_p11 = pnand %p867_p10, %p861_p7 }
  0x53   :  { %871 = shalt.err (!%p868_p11)
}
  0x54   :  { %76 = dma.hbm_to_vmem [thread:$0]  %s1132_s5, 2048, %s71_s28, [#allocation9], %s929_s10, %s929_s10, %s930_s12  }
  0x55   :  { %s933_s26 = smov [#allocation11]   ;;  %s872_s11 = scalar_lea.hbm %s1134_s7, 2048 }
  0x56   :  { %s84_s27 = sshll.u32 %s933_s26, 4  ;;  %p873_p12 = scmp.ne.s32.totalorder %s1134_s7, %s872_s11  ;;  %s85_s27 = int_to_ptr.vmem [resolvable:$true] %s84_s27 }
  0x57   :  { %p876_p13 = scmp.lt.u32.totalorder %s872_s11, %s1134_s7 }
  0x59   :  { %p878_p0 = pnand %p876_p13, %p873_p12 }
  0x5b   :  { %881 = shalt.err (!%p878_p0)
}
  0x5c   :  { %s882_s0 = scalar_lea.vmem %s85_s27, 2048  ;;  %p887_p2 = scmp.lt.s32.totalorder %s85_s27, %s85_s27 }
  0x5d   :  { %p883_p1 = scmp.ne.s32.totalorder %s85_s27, %s882_s0  ;;  %p888_p3 = scmp.lt.s32.totalorder %s882_s0, %s882_s0 }
  0x5f   :  { %p889_p4 = por %p888_p3, %p887_p2 }
  0x61   :  { %p890_p5 = pnand %p889_p4, %p883_p1 }
  0x63   :  { %893 = shalt.err (!%p890_p5)
}
  0x64   :  { %90 = dma.hbm_to_vmem [thread:$0]  %s1134_s7, 2048, %s85_s27, [#allocation12], %s929_s10, %s929_s10, %s930_s12  }
  0x65   :  { %916 = dma.done.wait [#allocation3], 64  }
  0x66   :  { %917 = vsyncadd [#allocation3], 4294967232 }
  0x67   :  { %918 = dma.done.wait [#allocation6], 2112  }
  0x68   :  { %919 = vsyncadd [#allocation6], 4294965184 }
  0x69   :  { %920 = dma.done.wait [#allocation9], 2560  }
  0x6a   :  { %921 = vsyncadd [#allocation9], 4294964736 }
  0x6b   :  { %922 = dma.done.wait [#allocation12], 2048  }
  0x6c   :  { %923 = vsyncadd [#allocation12], 4294965248  ;;  %v934_v0 = vmov 0.0|0.0   ;;  %vm935_vm0 = vmmov 0   ;;  %v936_v1 = vmov 0.0   ;;  %v112_v2 = vld [vmem:[#allocation7] sm:$0xff] }
  0x6d   :  { %676 = vmatprep.subr.bf16.mxu1 %v934_v0  ;;  %670 = vmatprep.subr.bf16.mxu0 %v934_v0  ;;  %v113_v3 = vld [vmem:[#allocation7 + $0x8] sm:$0xff]  ;;  %v114_v4 = vld [vmem:[#allocation7 + $0x10] sm:$0xff]  ;;  %v115_v6 = vld [vmem:[#allocation7 + $0x18] sm:$0xff]  ;;  %vm134_vm1 = vcmask 261120   ;;  %s937_s17 = smov [#allocation13]  }
  0x6e   :  { %562 = vmatprep.mubr.msk.f32.mxu0 %vm935_vm0, %v936_v1  ;;  %597 = vmatprep.mubr.msk.f32.mxu1 %vm935_vm0, %v936_v1  ;;  %v677_v5 = vpack.c.bf16 %v113_v3, %v112_v2  ;;  %v680_v7 = vpack.c.bf16 %v115_v6, %v114_v4  ;;  %v116_v8 = vld [vmem:[#allocation7 + $0x20] sm:$0xff]  ;;  %v117_v9 = vld [vmem:[#allocation7 + $0x28] sm:$0xff]  ;;  %v132_v13 = vld [vmem:[#allocation8 + $0x10] sm:$0xff]  ;;  %s482_s18 = sshll.u32 %s937_s17, 4  ;;  %s483_s18 = int_to_ptr.vmem [resolvable:$true] %s482_s18 }
  0x6f   :  { %v130_v10 = vld [vmem:[#allocation8] sm:$0xff]  ;;  %v131_v11 = vld [vmem:[#allocation8 + $0x8] sm:$0xff]  ;;  %v133_v14 = vld [vmem:[#allocation8 + $0x18] sm:$0xff]  ;;  %v683_v15 = vpack.c.bf16 %v117_v9, %v116_v8  ;;  %s894_s19 = scalar_lea.vmem %s483_s18, 64  ;;  %p899_p7 = scmp.lt.s32.totalorder %s483_s18, %s483_s18 }
  0x70   :  { %678 = vmatpush3.bf16.msra.mxu1 %v677_v5  ;;  %v671_v12 = vpack.c.bf16 %v131_v11, %v130_v10  ;;  %v118_v16 = vld [vmem:[#allocation7 + $0x30] sm:$0xff]  ;;  %v674_v17 = vpack.c.bf16 %v133_v14, %v132_v13  ;;  %v128_v18 = vld [vmem:[#allocation5] sm:$0xf]  ;;  %v287_v20 = vld [vmem:[#allocation10] sm:$0xff]  ;;  %p895_p6 = scmp.ne.s32.totalorder %s483_s18, %s894_s19  ;;  %p900_p8 = scmp.lt.s32.totalorder %s894_s19, %s894_s19 }
  0x71   :  { %679 = vmatprep.subr.bf16.mxu1 %v934_v0  ;;  %v119_v19 = vld [vmem:[#allocation7 + $0x38] sm:$0xff]  ;;  %v288_v21 = vld [vmem:[#allocation10 + $0x8] sm:$0xff]  ;;  %v129_v22 = vcvt.s32.f32 %v128_v18  ;;  %v120_v24 = vld [vmem:[#allocation7 + $0x40] sm:$0xff] }
  0x72   :  { %672 = vmatpush3.bf16.msra.mxu0 %v671_v12  ;;  %v686_v23 = vpack.c.bf16 %v119_v19, %v118_v16  ;;  %v701_v25 = vpack.c.bf16 %v288_v21, %v287_v20  ;;  %v121_v26 = vld [vmem:[#allocation7 + $0x48] sm:$0xff]  ;;  %v289_v27 = vld [vmem:[#allocation10 + $0x10] sm:$0xff]  ;;  %v290_v28 = vld [vmem:[#allocation10 + $0x18] sm:$0xff]  ;;  %p901_p9 = por %p900_p8, %p899_p7 }
  0x73   :  { %673 = vmatprep.subr.bf16.mxu0 %v934_v0  ;;  %v689_v29 = vpack.c.bf16 %v121_v26, %v120_v24  ;;  %v122_v30 = vld [vmem:[#allocation7 + $0x50] sm:$0xff]  ;;  %v704_v31 = vpack.c.bf16 %v290_v28, %v289_v27  ;;  %v123_v32 = vld [vmem:[#allocation7 + $0x58] sm:$0xff]  ;;  %v291_v33 = vld [vmem:[#allocation10 + $0x20] sm:$0xff] }
  0x74   :  { %681 = vmatpush3.bf16.msra.mxu1 %v680_v7  ;;  %v292_v34 = vld [vmem:[#allocation10 + $0x28] sm:$0xff]  ;;  %v692_v35 = vpack.c.bf16 %v123_v32, %v122_v30  ;;  %v124_v36 = vld [vmem:[#allocation7 + $0x60] sm:$0xff]  ;;  %v293_v39 = vld [vmem:[#allocation10 + $0x30] sm:$0xff]  ;;  %p902_p10 = pnand %p901_p9, %p895_p6 }
  0x75   :  { %682 = vmatprep.subr.bf16.mxu1 %v934_v0  ;;  %v707_v37 = vpack.c.bf16 %v292_v34, %v291_v33  ;;  %v125_v38 = vld [vmem:[#allocation7 + $0x68] sm:$0xff]  ;;  %v294_v40 = vld [vmem:[#allocation10 + $0x38] sm:$0xff]  ;;  %v126_v42 = vld [vmem:[#allocation7 + $0x70] sm:$0xff] }
  0x76   :  { %675 = vmatpush3.bf16.msra.mxu0 %v674_v17  ;;  %v695_v41 = vpack.c.bf16 %v125_v38, %v124_v36  ;;  %v710_v43 = vpack.c.bf16 %v294_v40, %v293_v39  ;;  %v127_v44 = vld [vmem:[#allocation7 + $0x78] sm:$0xff]  ;;  %v295_v45 = vld [vmem:[#allocation10 + $0x40] sm:$0xff]  ;;  %v296_v46 = vld [vmem:[#allocation10 + $0x48] sm:$0xff] }
  0x77   :  { %700 = vmatprep.subr.bf16.mxu0 %v934_v0  ;;  %v698_v47 = vpack.c.bf16 %v127_v44, %v126_v42  ;;  %v713_v48 = vpack.c.bf16 %v296_v46, %v295_v45  ;;  %v297_v49 = vld [vmem:[#allocation10 + $0x50] sm:$0xff]  ;;  %v298_v50 = vld [vmem:[#allocation10 + $0x58] sm:$0xff]  ;;  %v299_v53 = vld [vmem:[#allocation10 + $0x60] sm:$0xff] }
  0x78   :  { %684 = vmatpush3.bf16.msra.mxu1 %v683_v15  ;;  %v111_v51 = vld [vmem:[#allocation2] sm:$0xf]  ;;  %v716_v52 = vpack.c.bf16 %v298_v50, %v297_v49  ;;  %v300_v54 = vld [vmem:[#allocation10 + $0x68] sm:$0xff]  ;;  %v301_v56 = vld [vmem:[#allocation10 + $0x70] sm:$0xff] }
  0x79   :  { %685 = vmatprep.subr.bf16.mxu1 %v934_v0  ;;  %563 = vmatmul.mubr.msk.f32.vlgmr.msra.gmra.mrb[0].mxu0 %vm134_vm1, %v129_v22  ;;  %v719_v55 = vpack.c.bf16 %v300_v54, %v299_v53  ;;  %v302_v57 = vld [vmem:[#allocation10 + $0x78] sm:$0xff]  ;;  %v381_v59 = vld [vmem:[#allocation11] sm:$0xff]  ;;  %v382_v60 = vld [vmem:[#allocation11 + $0x8] sm:$0xff] }
  0x7a   :  { %702 = vmatpush3.bf16.msra.mxu0 %v701_v25  ;;  %632 = vmatprep.mubr.msk.f32.mxu0 %vm935_vm0, %v936_v1  ;;  %v722_v58 = vpack.c.bf16 %v302_v57, %v301_v56  ;;  %v383_v61 = vld [vmem:[#allocation11 + $0x10] sm:$0xff]  ;;  %v725_v62 = vpack.c.bf16 %v382_v60, %v381_v59  ;;  %v384_v63 = vld [vmem:[#allocation11 + $0x18] sm:$0xff]  ;;  %v386_v3 = vld [vmem:[#allocation11 + $0x28] sm:$0xff] }
  0x7b   :  { %703 = vmatprep.subr.bf16.mxu0 %v934_v0  ;;  %v728_v2 = vpack.c.bf16 %v384_v63, %v383_v61  ;;  %v387_v5 = vld [vmem:[#allocation11 + $0x30] sm:$0xff]  ;;  %v388_v6 = vld [vmem:[#allocation11 + $0x38] sm:$0xff]  ;;  %v389_v8 = vld [vmem:[#allocation11 + $0x40] sm:$0xff] }
  0x7c   :  { %687 = vmatpush3.bf16.msra.mxu1 %v686_v23  ;;  %v734_v7 = vpack.c.bf16 %v388_v6, %v387_v5  ;;  %v390_v9 = vld [vmem:[#allocation11 + $0x48] sm:$0xff]  ;;  %v391_v11 = vld [vmem:[#allocation11 + $0x50] sm:$0xff]  ;;  %v392_v12 = vld [vmem:[#allocation11 + $0x58] sm:$0xff] }
  0x7d   :  { %688 = vmatprep.subr.bf16.mxu1 %v934_v0  ;;  %v737_v10 = vpack.c.bf16 %v390_v9, %v389_v8  ;;  %v740_v13 = vpack.c.bf16 %v392_v12, %v391_v11  ;;  %v393_v14 = vld [vmem:[#allocation11 + $0x60] sm:$0xff]  ;;  %v394_v15 = vld [vmem:[#allocation11 + $0x68] sm:$0xff]  ;;  %v495_v20 = vld [vmem:[%s1131_s4] ss:$0 sm:$0xff] }
  0x7e   :  { %705 = vmatpush3.bf16.msra.mxu0 %v704_v31  ;;  %v743_v16 = vpack.c.bf16 %v394_v15, %v393_v14  ;;  %v395_v25 = vld [vmem:[#allocation11 + $0x70] sm:$0xff]  ;;  %v396_v26 = vld [vmem:[#allocation11 + $0x78] sm:$0xff] }
  0x7f   :  { %706 = vmatprep.subr.bf16.mxu0 %v934_v0  ;;  %v746_v27 = vpack.c.bf16 %v396_v26, %v395_v25  ;;  %v497_v32 = vld [vmem:[%s1135_s8] ss:$0 sm:$0xff] }
  0x80   :  { %690 = vmatpush3.bf16.msra.mxu1 %v689_v29 }
  0x81   :  { %691 = vmatprep.subr.bf16.mxu1 %v934_v0 }
  0x82   :  { %708 = vmatpush3.bf16.msra.mxu0 %v707_v37 }
  0x83   :  { %709 = vmatprep.subr.bf16.mxu0 %v934_v0 }
  0x84   :  { %693 = vmatpush3.bf16.msra.mxu1 %v692_v35 }
  0x85   :  { %694 = vmatprep.subr.bf16.mxu1 %v934_v0 }
  0x86   :  { %711 = vmatpush3.bf16.msra.mxu0 %v710_v43 }
  0x87   :  { %712 = vmatprep.subr.bf16.mxu0 %v934_v0 }
  0x88   :  { %696 = vmatpush3.bf16.msra.mxu1 %v695_v41 }
  0x89   :  { %697 = vmatprep.subr.bf16.mxu1 %v934_v0 }
  0x8a   :  { %714 = vmatpush3.bf16.msra.mxu0 %v713_v48 }
  0x8b   :  { %715 = vmatprep.subr.bf16.mxu0 %v934_v0 }
  0x8c   :  { %699 = vmatpush3.bf16.msra.mxu1 %v698_v47 }
  0x8d   :  { %724 = vmatprep.subr.bf16.mxu1 %v934_v0 }
  0x8e   :  { %717 = vmatpush3.bf16.msra.mxu0 %v716_v52 }
  0x8f   :  { %598 = vmatmul.mubr.f32.vlgmr.msra.gmra.mrb[0].mxu1 %v111_v51  ;;  %718 = vmatprep.subr.bf16.mxu0 %v934_v0 }
  0x90   :  { %667 = vmatprep.mubr.msk.f32.mxu1 %vm935_vm0, %v936_v1  ;;  %726 = vmatpush3.bf16.msra.mxu1 %v725_v62  ;;  %v385_v1 = vld [vmem:[#allocation11 + $0x20] sm:$0xff] }
  0x91   :  { %727 = vmatprep.subr.bf16.mxu1 %v934_v0  ;;  %v731_v4 = vpack.c.bf16 %v386_v3, %v385_v1 }
  0x92   :  { %720 = vmatpush3.bf16.msra.mxu0 %v719_v55 }
  0x93   :  { %721 = vmatprep.subr.bf16.mxu0 %v934_v0 }
  0x94   :  { %729 = vmatpush3.bf16.msra.mxu1 %v728_v2 }
  0x95   :  { %730 = vmatprep.subr.bf16.mxu1 %v934_v0 }
  0x96   :  { %723 = vmatpush3.bf16.msra.mxu0 %v722_v58 }
  0x98   :  { %732 = vmatpush3.bf16.msra.mxu1 %v731_v4 }
  0x99   :  { %733 = vmatprep.subr.bf16.mxu1 %v934_v0 }
  0x9c   :  { %735 = vmatpush3.bf16.msra.mxu1 %v734_v7 }
  0x9d   :  { %736 = vmatprep.subr.bf16.mxu1 %v934_v0 }
  0xa0   :  { %738 = vmatpush3.bf16.msra.mxu1 %v737_v10 }
  0xa1   :  { %739 = vmatprep.subr.bf16.mxu1 %v934_v0 }
  0xa4   :  { %741 = vmatpush3.bf16.msra.mxu1 %v740_v13 }
  0xa5   :  { %742 = vmatprep.subr.bf16.mxu1 %v934_v0 }
  0xa8   :  { %744 = vmatpush3.bf16.msra.mxu1 %v743_v16 }
  0xa9   :  { %745 = vmatprep.subr.bf16.mxu1 %v934_v0  ;;  %v496_v0 = vld [vmem:[%s1133_s6] ss:$0 sm:$0xff] }
  0xac   :  { %747 = vmatpush3.bf16.msra.mxu1 %v746_v27 }
 0x14c   :  { %v204_v17 = vpop.f32.mrb[0].mxu0 }
 0x14d   :  { %v564_v18 = vpop.f32.mrb[1].mxu0 }
 0x162   :  { %v274_v19 = vpop.f32.mrb[0].mxu1 }
 0x163   :  { %v275_v21 = vadd.f32 %v274_v19, %v204_v17  ;;  %v599_v22 = vpop.f32.mrb[1].mxu1 }
 0x165   :  { %v285_v23 = vadd.f32 %v495_v20, %v275_v21 }
 0x167   :  { %v286_v24 = vmax.f32 %v285_v23, 0.0 }
 0x169   :  { %633 = vmatmul.mubr.f32.vlgmr.msra.gmra.mrb[2].mxu0 %v286_v24 }
 0x23c   :  { %v376_v28 = vpop.f32.mrb[2].mxu0 }
 0x23d   :  { %v377_v29 = vadd.f32 %v496_v0, %v376_v28  ;;  %v634_v30 = vpop.f32.mrb[3].mxu0 }
 0x23f   :  { %v380_v31 = vmax.f32 %v377_v29, 0.0 }
 0x241   :  { %668 = vmatmul.mubr.f32.vlgmr.msra.gmra.mrb[2].mxu1 %v380_v31 }
 0x314   :  { %v470_v33 = vpop.f32.mrb[2].mxu1 }
 0x315   :  { %v471_v34 = vadd.f32 %v497_v32, %v470_v33  ;;  %v669_v35 = vpop.f32.mrb[3].mxu1 }
 0x317   :  { %760 = vtanh.f32 %v471_v34 }
 0x321   :  { %v761_v36 = vpop.eup %760 }
 0x322   :  { %475 = vst [vmem:[#allocation13] sm:$0xf] %v761_v36 }
 0x323   :  { %905 = shalt.err (!%p902_p10)
}
 0x324   :  { %s906_s8 = scalar_lea.hbm %s1136_s9, 64 }
 0x325   :  { %p907_p11 = scmp.ne.s32.totalorder %s1136_s9, %s906_s8  ;;  %p910_p12 = scmp.lt.u32.totalorder %s906_s8, %s1136_s9 }
 0x327   :  { %p912_p13 = pnand %p910_p12, %p907_p11 }
 0x329   :  { %915 = shalt.err (!%p912_p13)
}
 0x32a   :  { %485 = dma.vmem_to_hbm [thread:$0]  %s483_s18, 64, %s1136_s9, [#allocation4]  }
 0x32b   :  { %924 = dma.done.wait [#allocation4], 64  }
 0x32c   :  { %925 = vsyncadd [#allocation4], 4294967232 }
 0x32d   :  { %489 = vsyncpa [#allocation3], 1 }
 0x32e   :  { %490 = vsyncpa [#allocation6], 1 }
 0x32f   :  { %491 = vsyncpa [#allocation9], 1 }
 0x330   :  { %492 = vsyncpa [#allocation12], 1 }
 0x331   :  { %493 = vsyncpa [#allocation4], 1 }

</bundles_post_ra>
